<compile_context>
chip_gen: v5e
topology: v5e:2x2
jax: 0.10.0
libtpu: 0.0.40
codegen_flags: <defaults>
</compile_context>

<pallas_src>
import functools
from math import floor

import numpy as np
import jax
import jax.numpy as jnp
from jax import lax
from jax.experimental import pallas as pl
from jax.experimental.pallas import tpu as pltpu

BN_EPS = 1e-5
LANE = 128


def _round_up(x, m):
    return (x + m - 1) // m * m


def _cdiv(a, b):
    return (a + b - 1) // b


# --------------------------- single fused Pallas kernel ----------------------------
def _fused_net_kernel(x_ref, w_ref, s_ref, o_ref, *, k_sizes):
    """Chain of matmul + shift (+ ReLU on all but the last stage), fully VMEM/vreg
    resident.  f32 accumulation on the MXU, bf16 operands.

    x_ref : (BT, K0)        input tile (any float dtype; cast to bf16 here)
    w_ref : (sum(k), 128)   all folded weights, concatenated along rows, bf16
    s_ref : (n_layers, 128) folded bias/BN shifts, f32
    o_ref : (BT, 128)       lane-dense padded logits, f32
    """
    n_layers = len(k_sizes)
    shifts = s_ref[...]                               # (n_layers, 128) f32, tiny
    h = x_ref[...].astype(jnp.bfloat16)
    off = 0
    for i, k in enumerate(k_sizes):
        w = w_ref[off:off + k, :]                     # static slice, VMEM resident
        off += k
        acc = jnp.dot(h, w, preferred_element_type=jnp.float32)
        acc = acc + shifts[i]                         # folded conv/linear bias + BN
        if i < n_layers - 1:                          # ReLU after conv1..4 and fc1
            h = jnp.maximum(acc, 0.0).astype(jnp.bfloat16)
        else:                                         # fc2: no BN, no ReLU
            o_ref[...] = acc


def fused_forward(x_flat, w_all, s_all, k_sizes, nb_classes, *, block_rows=1024):
    """x_flat: (B, K0) torch-C-major flattened input (any float dtype).
    w_all:  (sum_K, 128) bf16 concatenated folded weights.
    s_all:  (n_layers, 128) f32 folded shifts.
    Returns (B, nb_classes) f32 logits via a single pallas_call."""
    B, K0 = x_flat.shape
    n_pad = int(w_all.shape[1])
    assert nb_classes <= n_pad
    assert int(w_all.shape[0]) == sum(k_sizes)

    # Tiles divide the rounded batch evenly (no near-full-tile padding waste);
    # force >=2 grid steps for B>=32 so both v7x TensorCores get work; 16-row
    # alignment for clean bf16 sublane packing.
    n_tiles = max(1, _cdiv(B, block_rows))
    if B >= 32:
        n_tiles = max(n_tiles, 2)
    BT = _round_up(_cdiv(B, n_tiles), 16)
    Bp = BT * n_tiles
    if Bp != B:
        x_flat = jnp.pad(x_flat, ((0, Bp - B), (0, 0)))

    flops = 2 * Bp * sum(int(k) * n_pad for k in k_sizes)
    bytes_accessed = (Bp * K0 * x_flat.dtype.itemsize + Bp * n_pad * 4
                      + int(w_all.size) * w_all.dtype.itemsize + int(s_all.size) * 4)

    out = pl.pallas_call(
        functools.partial(_fused_net_kernel,
                          k_sizes=tuple(int(k) for k in k_sizes)),
        out_shape=jax.ShapeDtypeStruct((Bp, n_pad), jnp.float32),
        grid=(n_tiles,),
        in_specs=[
            pl.BlockSpec((BT, K0), lambda i: (i, 0)),      # streamed batch tile
            pl.BlockSpec(tuple(w_all.shape), lambda i: (0, 0)),  # VMEM-resident weights
            pl.BlockSpec(tuple(s_all.shape), lambda i: (0, 0)),  # VMEM-resident shifts
        ],
        out_specs=pl.BlockSpec((BT, n_pad), lambda i: (i, 0)),
        compiler_params=pltpu.CompilerParams(
            dimension_semantics=("parallel",),
            vmem_limit_bytes=32 * 1024 * 1024),            # explicit (v5e default 16MiB)
        cost_estimate=pl.CostEstimate(flops=flops, transcendentals=0,
                                      bytes_accessed=bytes_accessed),
    )(x_flat, w_all, s_all)
    return out[:B, :nb_classes]


# ----------------------------- host-side weight folding -----------------------------
def fold_bn_np(bias, gamma, beta, mean, var):
    """Fold conv/linear bias + eval-mode BatchNorm into (scale, shift)."""
    gamma = np.asarray(gamma, np.float32)
    var = np.asarray(var, np.float32)
    s = gamma / np.sqrt(var + BN_EPS)
    shift = (np.asarray(bias, np.float32) - np.asarray(mean, np.float32)) * s \
        + np.asarray(beta, np.float32)
    return s.astype(np.float32), shift.astype(np.float32)


def conv_unrolled_matrix(w, lin, stride, pad):
    """w: (Cout, Cin, k) torch-layout conv weight.

    Returns dense W (Lin*Cin, Lo*Cout) and Lo such that for channels-last flattened
    activations x_flat[b, l*Cin + c]:  (x_flat @ W)[b, o*Cout + co] = Conv1d(x)[b,co,o].
    Conv zero-padding is encoded as zero rows (taps outside [0, Lin))."""
    cout, cin, k = w.shape
    lo = (lin + 2 * pad - k) // stride + 1
    W = np.zeros((lin * cin, lo * cout), np.float32)
    for o in range(lo):
        for t in range(k):
            li = o * stride + t - pad
            if 0 <= li < lin:
                W[li * cin:(li + 1) * cin, o * cout:(o + 1) * cout] = w[:, :, t].T
    return W, lo


def build_fused_weights(params, cfg):
    """Pre-lower the whole network to one (sum_K, 128) bf16 weight slab plus one
    (n_layers, 128) f32 shift slab:
      * BN scale / bias folded into the weights / shifts (eval-mode BN),
      * first layer's rows in torch C-major flatten order (no input transpose),
      * every layer's output width zero-padded to 128 lanes (numerically exact),
        with the next layer's rows padded to match."""
    lin = cfg['window_size']
    cin0 = cfg['nb_channels']
    real = []                                            # [(W (K,N), shift (N,))]

    for li, layer in enumerate(params['convs']):
        w = np.asarray(layer['w'], np.float32)
        Wb, lo = conv_unrolled_matrix(w, lin, layer['stride'], layer['pad'])
        if li == 0:
            # Row reorder to torch's C-major flatten: new row (c*L + l) <- old (l*C + c)
            perm = (np.arange(lin)[None, :] * cin0
                    + np.arange(cin0)[:, None]).reshape(-1)
            Wb = Wb[perm, :]
        s, sh = fold_bn_np(layer['bias'], layer['gamma'], layer['beta'],
                           layer['mean'], layer['var'])
        real.append((Wb * np.tile(s, lo)[None, :], np.tile(sh, lo)))
        lin = lo

    # fc1: permute columns from torch's C-major flatten of the NCL conv4 output to our
    # L-major (channels-last) flatten.  (Identity when L4 == 1.)
    cout4 = params['convs'][-1]['cout']
    L4 = lin
    w1 = np.asarray(params['fc1']['w'], np.float32)       # (fc_filters, C4*L4)
    perm = (np.arange(cout4)[None, :] * L4
            + np.arange(L4)[:, None]).reshape(-1)         # perm[l*C + c] = c*L + l
    s1, sh1 = fold_bn_np(params['fc1']['bias'], params['fc1']['gamma'],
                         params['fc1']['beta'], params['fc1']['mean'],
                         params['fc1']['var'])
    real.append((w1[:, perm].T * s1[None, :], sh1))

    # fc2: plain Linear, no BN, no ReLU.
    w2 = np.asarray(params['fc2']['w'], np.float32)       # (nb_classes, fc_filters)
    real.append((w2.T.copy(), np.asarray(params['fc2']['bias'], np.float32)))

    # Zero-pad every output width to 128 lanes; rows of layer i+1 padded to match
    # layer i's padded width (zeros propagate exactly through matmul/+0/ReLU).
    n_pad = max(LANE, _round_up(max(W.shape[1] for W, _ in real), LANE))
    w_blocks, s_rows, k_sizes = [], [], []
    k_padded = int(real[0][0].shape[0])                   # input width K0 stays unpadded
    for W, sh in real:
        k_real, n_real = W.shape
        assert k_real <= k_padded and n_real <= n_pad
        Wp = np.zeros((k_padded, n_pad), np.float32)
        Wp[:k_real, :n_real] = W
        sp = np.zeros((n_pad,), np.float32)
        sp[:n_real] = sh
        w_blocks.append(Wp)
        s_rows.append(sp)
        k_sizes.append(k_padded)
        k_padded = n_pad
    w_all = jnp.asarray(np.concatenate(w_blocks, axis=0), jnp.bfloat16)
    s_all = jnp.asarray(np.stack(s_rows, axis=0), jnp.float32)
    return w_all, s_all, tuple(k_sizes)


# --------------------------------- parameter init ----------------------------------
def init_params(cfg, key):
    nb_channels = cfg['nb_channels']
    cf = cfg['conv_filters']
    fw = cfg['filter_width']

    def _w(k, shape):
        fan_in = int(np.prod(shape[1:]))
        return jax.random.normal(k, shape, jnp.float32) / jnp.sqrt(fan_in)

    def _bn(k, c):
        k1, k2, k3, k4 = jax.random.split(k, 4)
        return (jax.random.uniform(k1, (c,), jnp.float32, 0.5, 1.5),
                0.1 * jax.random.normal(k2, (c,), jnp.float32),
                0.1 * jax.random.normal(k3, (c,), jnp.float32),
                jax.random.uniform(k4, (c,), jnp.float32, 0.5, 1.5))

    keys = jax.random.split(key, 17)
    params = {'convs': []}
    conv_defs = [
        (nb_channels, cf, 3, 1, 1),        # conv1: k=3, stride=1, pad=1
        (cf, cf * 2, fw, 2, 0),            # conv2
        (cf * 2, cf * 4, fw, 2, 0),        # conv3
        (cf * 4, cf * 8, fw, 2, 0),        # conv4
    ]
    ki = 0
    for (cin, cout, k, stride, pad) in conv_defs:
        w = _w(keys[ki], (cout, cin, k)); ki += 1
        b = 0.1 * jax.random.normal(keys[ki], (cout,), jnp.float32); ki += 1
        gamma, beta, mean, var = _bn(keys[ki], cout); ki += 1
        params['convs'].append(dict(w=w, stride=stride, pad=pad, cout=cout, bias=b,
                                    gamma=gamma, beta=beta, mean=mean, var=var))

    fin = cfg['_L4'] * cf * 8
    w1 = _w(keys[ki], (cfg['fc_filters'], fin)); ki += 1
    b1 = 0.1 * jax.random.normal(keys[ki], (cfg['fc_filters'],), jnp.float32); ki += 1
    g1, be1, m1, v1 = _bn(keys[ki], cfg['fc_filters']); ki += 1
    w2 = _w(keys[ki], (cfg['nb_classes'], cfg['fc_filters'])); ki += 1
    b2 = 0.1 * jax.random.normal(keys[ki], (cfg['nb_classes'],), jnp.float32); ki += 1
    params['fc1'] = dict(w=w1, bias=b1, gamma=g1, beta=be1, mean=m1, var=v1)
    params['fc2'] = dict(w=w2, bias=b2)
    return params


# -------------------------------- forward functions ---------------------------------
def cnn_forward_pallas(x, fused, cfg, *, block_rows=1024):
    w_all, s_all, k_sizes = fused
    flat_dim = cfg['nb_channels'] * cfg['window_size']
    # torch's x.view(-1, C, L) followed by a row-major flatten: a free reshape, no
    # transpose -- the C-major ordering is baked into the first weight slab's rows.
    x_flat = x.reshape(-1, flat_dim)
    return fused_forward(x_flat, w_all, s_all, k_sizes, cfg['nb_classes'],
                         block_rows=block_rows)


def fused_reference(x_flat, w_all, s_all, k_sizes, nb_classes):
    """Plain-XLA mirror of the kernel math (bf16 operands, f32 accumulation)."""
    h = x_flat.astype(jnp.bfloat16)
    off = 0
    out = None
    for i, k in enumerate(k_sizes):
        w = w_all[off:off + k, :]
        off += k
        acc = jnp.dot(h, w, preferred_element_type=jnp.float32) + s_all[i]
        if i < len(k_sizes) - 1:
            h = jnp.maximum(acc, 0.0).astype(jnp.bfloat16)
        else:
            out = acc
    return out[:, :nb_classes]


def cnn_forward_ref(x, params, cfg):
    """Pure-JAX f32 reference mirroring the PyTorch module (eval-mode BN)."""
    out = x.reshape(-1, cfg['nb_channels'], cfg['window_size'])
    for layer in params['convs']:
        y = lax.conv_general_dilated(
            out, layer['w'], window_strides=(layer['stride'],),
            padding=[(layer['pad'], layer['pad'])],
            dimension_numbers=('NCH', 'OIH', 'NCH'))
        y = y + layer['bias'][None, :, None]
        y = ((y - layer['mean'][None, :, None])
             / jnp.sqrt(layer['var'][None, :, None] + BN_EPS)
             * layer['gamma'][None, :, None] + layer['beta'][None, :, None])
        out = jnp.maximum(y, 0.0)
    flat = out.reshape(out.shape[0], -1)                  # torch C-major flatten
    h = flat @ params['fc1']['w'].T + params['fc1']['bias']
    h = ((h - params['fc1']['mean']) / jnp.sqrt(params['fc1']['var'] + BN_EPS)
         * params['fc1']['gamma'] + params['fc1']['beta'])
    h = jnp.maximum(h, 0.0)
    return h @ params['fc2']['w'].T + params['fc2']['bias']


# -------------------------------------- main -----------------------------------------
if __name__ == "__main__":
    cfg = {
        'window_size': 16,
        'drop_prob': 0.5,        # unused in forward
        'nb_channels': 4,
        'nb_classes': 6,
        'seed': 0,
        'conv_filters': 8,
        'fc_filters': 32,
        'filter_width': 3,
        'max1d_width': 2,        # unused in forward
    }
    # Replicate the module's __init__ length arithmetic (for fc1 fan-in).
    o1 = cfg['window_size']
    o2 = floor((o1 - cfg['filter_width']) / 2) + 1
    o3 = floor((o2 - cfg['filter_width']) / 2) + 1
    o4 = floor((o3 - cfg['filter_width']) / 2) + 1
    cfg['_L4'] = o4

    key = jax.random.PRNGKey(0)
    kp, kx = jax.random.split(key)
    params = init_params(cfg, kp)
    fused = build_fused_weights(params, cfg)      # one-time host-side lowering

    batch = 2
    x = jax.random.normal(kx, (batch, cfg['nb_channels'], cfg['window_size']),
                          jnp.float32)

    out = jax.block_until_ready(cnn_forward_pallas(x, fused, cfg))
    assert out.shape == (batch, cfg['nb_classes']), out.shape

    # Tight check: same bf16 math through plain XLA (validates kernel plumbing:
    # perms, padding, offsets, tiling).
    w_all, s_all, k_sizes = fused
    mirror = jax.block_until_ready(
        fused_reference(x.reshape(batch, -1), w_all, s_all, k_sizes,
                        cfg['nb_classes']))
    assert jnp.allclose(out, mirror, atol=1e-2, rtol=1e-2), \
        f"kernel vs bf16 mirror max err {jnp.max(jnp.abs(out - mirror))}"

    # End-to-end check against the f32 PyTorch-equivalent reference; tolerance sized
    # for the bf16 weight/activation quantization (the only numerics change).
    ref = jax.block_until_ready(cnn_forward_ref(x, params, cfg))
    assert jnp.allclose(out, ref, atol=5e-2, rtol=5e-2), \
        f"kernel vs f32 reference max err {jnp.max(jnp.abs(out - ref))}"

    print("KERNEL_OK")
</pallas_src>

<mosaic_0001>
module attributes {stable_mosaic.version = 11 : i64} {
  func.func @_fused_net_kernel(%arg0: i32, %arg1: memref<16x64xf32, #tpu.memory_space<vmem>>, %arg2: memref<704x128xbf16, #tpu.memory_space<vmem>>, %arg3: memref<6x128xf32, #tpu.memory_space<vmem>>, %arg4: memref<16x128xf32, #tpu.memory_space<vmem>>) attributes {dimension_semantics = [#tpu.dimension_semantics<parallel>], iteration_bounds = array<i64: 1>, scalar_prefetch = 0 : i64, scratch_operands = 0 : i64, tpu.core_type = #tpu.core_type<tc>, window_params = [{transform_indices = @transform_0, window_bounds = array<i64: 16, 64>}, {pipeline_mode = #tpu.pipeline_mode<synchronous>, transform_indices = @transform_1, window_bounds = array<i64: 704, 128>}, {pipeline_mode = #tpu.pipeline_mode<synchronous>, transform_indices = @transform_2, window_bounds = array<i64: 6, 128>}, {transform_indices = @transform_3, window_bounds = array<i64: 16, 128>}]} {
    %c0 = arith.constant 0 : index
    %c0_0 = arith.constant 0 : index
    %0 = vector.load %arg3[%c0, %c0_0] : memref<6x128xf32, #tpu.memory_space<vmem>>, vector<6x128xf32>
    %c0_1 = arith.constant 0 : index
    %c0_2 = arith.constant 0 : index
    %1 = vector.load %arg1[%c0_1, %c0_2] : memref<16x64xf32, #tpu.memory_space<vmem>>, vector<16x64xf32>
    %2 = arith.truncf %1 : vector<16x64xf32> to vector<16x64xbf16>
    %c0_3 = arith.constant 0 : index
    %c0_4 = arith.constant 0 : index
    %3 = vector.load %arg2[%c0_3, %c0_4] : memref<704x128xbf16, #tpu.memory_space<vmem>>, vector<64x128xbf16>
    %cst = arith.constant dense<0.000000e+00> : vector<16x128xf32>
    %4 = tpu.matmul %2, %3, %cst {dimension_numbers = #tpu.dot_dimension_numbers<[1], [0], [0], [1], [0, 0, 1, 1], [], []>} : vector<16x64xbf16>, vector<64x128xbf16>, vector<16x128xf32> -> vector<16x128xf32>
    %5 = vector.extract_strided_slice %0 {offsets = [0, 0], sizes = [1, 128], strides = [1, 1]} : vector<6x128xf32> to vector<1x128xf32>
    %6 = vector.shape_cast %5 : vector<1x128xf32> to vector<128xf32>
    %7 = vector.shape_cast %6 : vector<128xf32> to vector<1x128xf32>
    %8 = vector.broadcast %7 : vector<1x128xf32> to vector<16x128xf32>
    %9 = arith.addf %4, %8 : vector<16x128xf32>
    %cst_5 = arith.constant 0.000000e+00 : f32
    %10 = vector.broadcast %cst_5 : f32 to vector<16x128xf32>
    %11 = arith.maximumf %9, %10 : vector<16x128xf32>
    %12 = arith.truncf %11 : vector<16x128xf32> to vector<16x128xbf16>
    %c64 = arith.constant 64 : index
    %c0_6 = arith.constant 0 : index
    %13 = vector.load %arg2[%c64, %c0_6] : memref<704x128xbf16, #tpu.memory_space<vmem>>, vector<128x128xbf16>
    %cst_7 = arith.constant dense<0.000000e+00> : vector<16x128xf32>
    %14 = tpu.matmul %12, %13, %cst_7 {dimension_numbers = #tpu.dot_dimension_numbers<[1], [0], [0], [1], [0, 0, 1, 1], [], []>} : vector<16x128xbf16>, vector<128x128xbf16>, vector<16x128xf32> -> vector<16x128xf32>
    %15 = vector.extract_strided_slice %0 {offsets = [1, 0], sizes = [1, 128], strides = [1, 1]} : vector<6x128xf32> to vector<1x128xf32>
    %16 = vector.shape_cast %15 : vector<1x128xf32> to vector<128xf32>
    %17 = vector.shape_cast %16 : vector<128xf32> to vector<1x128xf32>
    %18 = vector.broadcast %17 : vector<1x128xf32> to vector<16x128xf32>
    %19 = arith.addf %14, %18 : vector<16x128xf32>
    %cst_8 = arith.constant 0.000000e+00 : f32
    %20 = vector.broadcast %cst_8 : f32 to vector<16x128xf32>
    %21 = arith.maximumf %19, %20 : vector<16x128xf32>
    %22 = arith.truncf %21 : vector<16x128xf32> to vector<16x128xbf16>
    %c192 = arith.constant 192 : index
    %c0_9 = arith.constant 0 : index
    %23 = vector.load %arg2[%c192, %c0_9] : memref<704x128xbf16, #tpu.memory_space<vmem>>, vector<128x128xbf16>
    %cst_10 = arith.constant dense<0.000000e+00> : vector<16x128xf32>
    %24 = tpu.matmul %22, %23, %cst_10 {dimension_numbers = #tpu.dot_dimension_numbers<[1], [0], [0], [1], [0, 0, 1, 1], [], []>} : vector<16x128xbf16>, vector<128x128xbf16>, vector<16x128xf32> -> vector<16x128xf32>
    %25 = vector.extract_strided_slice %0 {offsets = [2, 0], sizes = [1, 128], strides = [1, 1]} : vector<6x128xf32> to vector<1x128xf32>
    %26 = vector.shape_cast %25 : vector<1x128xf32> to vector<128xf32>
    %27 = vector.shape_cast %26 : vector<128xf32> to vector<1x128xf32>
    %28 = vector.broadcast %27 : vector<1x128xf32> to vector<16x128xf32>
    %29 = arith.addf %24, %28 : vector<16x128xf32>
    %cst_11 = arith.constant 0.000000e+00 : f32
    %30 = vector.broadcast %cst_11 : f32 to vector<16x128xf32>
    %31 = arith.maximumf %29, %30 : vector<16x128xf32>
    %32 = arith.truncf %31 : vector<16x128xf32> to vector<16x128xbf16>
    %c320 = arith.constant 320 : index
    %c0_12 = arith.constant 0 : index
    %33 = vector.load %arg2[%c320, %c0_12] : memref<704x128xbf16, #tpu.memory_space<vmem>>, vector<128x128xbf16>
    %cst_13 = arith.constant dense<0.000000e+00> : vector<16x128xf32>
    %34 = tpu.matmul %32, %33, %cst_13 {dimension_numbers = #tpu.dot_dimension_numbers<[1], [0], [0], [1], [0, 0, 1, 1], [], []>} : vector<16x128xbf16>, vector<128x128xbf16>, vector<16x128xf32> -> vector<16x128xf32>
    %35 = vector.extract_strided_slice %0 {offsets = [3, 0], sizes = [1, 128], strides = [1, 1]} : vector<6x128xf32> to vector<1x128xf32>
    %36 = vector.shape_cast %35 : vector<1x128xf32> to vector<128xf32>
    %37 = vector.shape_cast %36 : vector<128xf32> to vector<1x128xf32>
    %38 = vector.broadcast %37 : vector<1x128xf32> to vector<16x128xf32>
    %39 = arith.addf %34, %38 : vector<16x128xf32>
    %cst_14 = arith.constant 0.000000e+00 : f32
    %40 = vector.broadcast %cst_14 : f32 to vector<16x128xf32>
    %41 = arith.maximumf %39, %40 : vector<16x128xf32>
    %42 = arith.truncf %41 : vector<16x128xf32> to vector<16x128xbf16>
    %c448 = arith.constant 448 : index
    %c0_15 = arith.constant 0 : index
    %43 = vector.load %arg2[%c448, %c0_15] : memref<704x128xbf16, #tpu.memory_space<vmem>>, vector<128x128xbf16>
    %cst_16 = arith.constant dense<0.000000e+00> : vector<16x128xf32>
    %44 = tpu.matmul %42, %43, %cst_16 {dimension_numbers = #tpu.dot_dimension_numbers<[1], [0], [0], [1], [0, 0, 1, 1], [], []>} : vector<16x128xbf16>, vector<128x128xbf16>, vector<16x128xf32> -> vector<16x128xf32>
    %45 = vector.extract_strided_slice %0 {offsets = [4, 0], sizes = [1, 128], strides = [1, 1]} : vector<6x128xf32> to vector<1x128xf32>
    %46 = vector.shape_cast %45 : vector<1x128xf32> to vector<128xf32>
    %47 = vector.shape_cast %46 : vector<128xf32> to vector<1x128xf32>
    %48 = vector.broadcast %47 : vector<1x128xf32> to vector<16x128xf32>
    %49 = arith.addf %44, %48 : vector<16x128xf32>
    %cst_17 = arith.constant 0.000000e+00 : f32
    %50 = vector.broadcast %cst_17 : f32 to vector<16x128xf32>
    %51 = arith.maximumf %49, %50 : vector<16x128xf32>
    %52 = arith.truncf %51 : vector<16x128xf32> to vector<16x128xbf16>
    %c576 = arith.constant 576 : index
    %c0_18 = arith.constant 0 : index
    %53 = vector.load %arg2[%c576, %c0_18] : memref<704x128xbf16, #tpu.memory_space<vmem>>, vector<128x128xbf16>
    %cst_19 = arith.constant dense<0.000000e+00> : vector<16x128xf32>
    %54 = tpu.matmul %52, %53, %cst_19 {dimension_numbers = #tpu.dot_dimension_numbers<[1], [0], [0], [1], [0, 0, 1, 1], [], []>} : vector<16x128xbf16>, vector<128x128xbf16>, vector<16x128xf32> -> vector<16x128xf32>
    %55 = vector.extract_strided_slice %0 {offsets = [5, 0], sizes = [1, 128], strides = [1, 1]} : vector<6x128xf32> to vector<1x128xf32>
    %56 = vector.shape_cast %55 : vector<1x128xf32> to vector<128xf32>
    %57 = vector.shape_cast %56 : vector<128xf32> to vector<1x128xf32>
    %58 = vector.broadcast %57 : vector<1x128xf32> to vector<16x128xf32>
    %59 = arith.addf %54, %58 : vector<16x128xf32>
    %c0_20 = arith.constant 0 : index
    %c0_21 = arith.constant 0 : index
    %60 = vector.load %arg4[%c0_20, %c0_21] : memref<16x128xf32, #tpu.memory_space<vmem>>, vector<16x128xf32>
    tpu.vector_store %arg4[%c0_20, %c0_21], %59 {strides = array<i32>} : memref<16x128xf32, #tpu.memory_space<vmem>>, vector<16x128xf32>,
    return
  }
  func.func @transform_0(%arg0: i32) -> (i32, i32) {
    %c0_i32 = arith.constant 0 : i32
    %c0_i32_0 = arith.constant 0 : i32
    return %arg0, %c0_i32 : i32, i32
  }
  func.func @transform_1(%arg0: i32) -> (i32, i32) {
    %c0_i32 = arith.constant 0 : i32
    %c0_i32_0 = arith.constant 0 : i32
    %c0_i32_1 = arith.constant 0 : i32
    return %c0_i32, %c0_i32_0 : i32, i32
  }
  func.func @transform_2(%arg0: i32) -> (i32, i32) {
    %c0_i32 = arith.constant 0 : i32
    %c0_i32_0 = arith.constant 0 : i32
    %c0_i32_1 = arith.constant 0 : i32
    return %c0_i32, %c0_i32_0 : i32, i32
  }
  func.func @transform_3(%arg0: i32) -> (i32, i32) {
    %c0_i32 = arith.constant 0 : i32
    %c0_i32_0 = arith.constant 0 : i32
    return %arg0, %c0_i32 : i32, i32
  }
}

</mosaic_0001>

<bundles_post_ra>
// kernel: tpu_custom_call.1
= control target key start
LH: loop header
LB: loop body
LE: loop exit
PB: predicated region body
PF: predicated region fallthrough
CT: control target
= control target key end

     0   :  { %8 = vsyncpa [#allocation3], 0  ;;  %s933_s0 = inlined_call_operand.hbm [shape: f32[16,64], index: 0, kind: input, shape index: {}]   ;;  %s934_s1 = inlined_call_operand.hbm [shape: bf16[704,128], index: 1, kind: input, shape index: {}]   ;;  %s935_s2 = inlined_call_operand.hbm [shape: f32[6,128], index: 2, kind: input, shape index: {}]   ;;  %s936_s3 = inlined_call_operand.hbm [shape: f32[16,128], index: 3, kind: output, shape index: {}]  }
   0x1   :  { %9 = vsyncpa [#allocation6], 0  ;;  %s28_s14 = sshll.u32 %s934_s1, 4  ;;  %s29_s14 = int_to_ptr.hbm [resolvable:$true] %s28_s14 }
   0x2   :  { %10 = vsyncpa [#allocation4], 0  ;;  %s879_s15 = smov [#allocation5]   ;;  %s15_s19 = sshll.u32 %s933_s0, 4  ;;  %s16_s19 = int_to_ptr.hbm [resolvable:$true] %s15_s19 }
   0x3   :  { %s30_s16 = sshll.u32 %s879_s15, 4  ;;  %s880_s20 = smov 64   ;;  %s31_s16 = int_to_ptr.vmem [resolvable:$true] %s30_s16 }
   0x4   :  { %s881_s21 = smov 4   ;;  %s882_s22 = smov [#allocation2]  }
   0x5   :  { %36 = dma.hbm_to_vmem [thread:$0]  %s29_s14, 5632, %s31_s16, [#allocation6], %s880_s20, %s880_s20, %s881_s21  }
   0x6   :  { %s17_s23 = sshll.u32 %s882_s22, 4  ;;  %s883_s24 = smov 128   ;;  %s18_s23 = int_to_ptr.vmem [resolvable:$true] %s17_s23 }
   0x7   :  { %s884_s25 = smov 8   ;;  %s42_s27 = sshll.u32 %s935_s2, 4  ;;  %s43_s27 = int_to_ptr.hbm [resolvable:$true] %s42_s27 }
   0x8   :  { %23 = dma.hbm_to_vmem [thread:$0]  %s16_s19, 256, %s18_s23, [#allocation3], %s883_s24, %s883_s24, %s884_s25  }
   0x9   :  { %s885_s28 = smov [#allocation7]  }
   0xa   :  { %s44_s0 = sshll.u32 %s885_s28, 4  ;;  %s45_s0 = int_to_ptr.vmem [resolvable:$true] %s44_s0 }
   0xb   :  { %47 = dma.hbm_to_vmem [thread:$0]  %s43_s27, 128, %s45_s0, [#allocation6]  }
   0xc   :  { %873 = dma.done.wait [#allocation3], 256  }
   0xd   :  { %874 = vsyncadd [#allocation3], 4294967040 }
   0xe   :  { %875 = dma.done.wait [#allocation6], 5760  }
   0xf   :  { %876 = vsyncadd [#allocation6], 4294961536  ;;  %v728_v0 = vld [vmem:[#allocation5 + $0x18] sm:$0xff]  ;;  %v727_v1 = vld [vmem:[#allocation5 + $0x10] sm:$0xff]  ;;  %vm98_vm0 = vcmask 523264   ;;  %s886_s2 = smov [#allocation8]  }
  0x10   :  { %106 = vmatpush.bf16.msra.mxu0 %v728_v0  ;;  %v736_v2 = vld [vmem:[#allocation5 + $0x58] sm:$0xff]  ;;  %v735_v3 = vld [vmem:[#allocation5 + $0x50] sm:$0xff]  ;;  %v726_v4 = vld [vmem:[#allocation5 + $0x8] sm:$0xff]  ;;  %s532_s29 = sshll.u32 %s886_s2, 4  ;;  %s534_s5 = sshll.u32 %s936_s3, 4  ;;  %s533_s29 = int_to_ptr.vmem [resolvable:$true] %s532_s29  ;;  %s535_s5 = int_to_ptr.hbm [resolvable:$true] %s534_s5 }
  0x11   :  { %184 = vmatpush.bf16.msra.mxu1 %v736_v2  ;;  %v734_v5 = vld [vmem:[#allocation5 + $0x48] sm:$0xff]  ;;  %v725_v6 = vld [vmem:[#allocation5] sm:$0xff]  ;;  %v62_v7 = vld [vmem:[#allocation2] sm:$0xff] }
  0x12   :  { %v63_v8 = vld [vmem:[#allocation2 + $0x8] sm:$0xff]  ;;  %v733_v9 = vld [vmem:[#allocation5 + $0x40] sm:$0xff]  ;;  %v731_v12 = vld [vmem:[#allocation5 + $0x30] sm:$0xff] }
  0x13   :  { %v64_v10 = vpack.c.bf16 %v63_v8, %v62_v7  ;;  %v732_v11 = vld [vmem:[#allocation5 + $0x38] sm:$0xff]  ;;  %v730_v13 = vld [vmem:[#allocation5 + $0x28] sm:$0xff]  ;;  %v729_v14 = vld [vmem:[#allocation5 + $0x20] sm:$0xff] }
  0x14   :  { %107 = vmatpush.bf16.msra.mxu0 %v727_v1  ;;  %v744_v15 = vld [vmem:[#allocation5 + $0x98] sm:$0xff]  ;;  %v743_v16 = vld [vmem:[#allocation5 + $0x90] sm:$0xff]  ;;  %v742_v17 = vld [vmem:[#allocation5 + $0x88] sm:$0xff] }
  0x15   :  { %185 = vmatpush.bf16.msra.mxu1 %v735_v3  ;;  %266 = vmatpush.bf16.msra.mxu2 %v744_v15  ;;  %v741_v18 = vld [vmem:[#allocation5 + $0x80] sm:$0xff]  ;;  %v740_v28 = vld [vmem:[#allocation5 + $0x78] sm:$0xff]  ;;  %v739_v29 = vld [vmem:[#allocation5 + $0x70] sm:$0xff] }
  0x16   :  { %v919_v19 = vld [vmem:[#allocation7] sm:$0x3f]  ;;  %v738_v30 = vld [vmem:[#allocation5 + $0x68] sm:$0xff]  ;;  %v752_v32 = vld [vmem:[#allocation5 + $0xd8] sm:$0xff] }
  0x17   :  { %v73_v21 = vperm.slane %v919_v19, 0  ;;  %v737_v31 = vld [vmem:[#allocation5 + $0x60] sm:$0xff]  ;;  %348 = vmatpush.bf16.msra.mxu3 %v752_v32  ;;  %v751_v33 = vld [vmem:[#allocation5 + $0xd0] sm:$0xff]  ;;  %v750_v34 = vld [vmem:[#allocation5 + $0xc8] sm:$0xff]  ;;  %v135_v37 = vperm.slane %v919_v19, 1  ;;  %v217_v53 = vperm.slane %v919_v19, 2 }
  0x18   :  { %108 = vmatpush.bf16.msra.mxu0 %v726_v4  ;;  %v749_v35 = vld [vmem:[#allocation5 + $0xc0] sm:$0xff]  ;;  %v748_v44 = vld [vmem:[#allocation5 + $0xb8] sm:$0xff]  ;;  %v747_v45 = vld [vmem:[#allocation5 + $0xb0] sm:$0xff] }
  0x19   :  { %186 = vmatpush.bf16.msra.mxu1 %v734_v5  ;;  %267 = vmatpush.bf16.msra.mxu2 %v743_v16  ;;  %v746_v46 = vld [vmem:[#allocation5 + $0xa8] sm:$0xff]  ;;  %v745_v47 = vld [vmem:[#allocation5 + $0xa0] sm:$0xff]  ;;  %v760_v48 = vld [vmem:[#allocation5 + $0x118] sm:$0xff]  ;;  %v299_v5 = vperm.slane %v919_v19, 3 }
  0x1a   :  { %v759_v49 = vld [vmem:[#allocation5 + $0x110] sm:$0xff]  ;;  %v758_v50 = vld [vmem:[#allocation5 + $0x108] sm:$0xff]  ;;  %v757_v51 = vld [vmem:[#allocation5 + $0x100] sm:$0xff] }
  0x1b   :  { %349 = vmatpush.bf16.msra.mxu3 %v751_v33  ;;  %v756_v60 = vld [vmem:[#allocation5 + $0xf8] sm:$0xff]  ;;  %v755_v61 = vld [vmem:[#allocation5 + $0xf0] sm:$0xff]  ;;  %v754_v62 = vld [vmem:[#allocation5 + $0xe8] sm:$0xff] }
  0x1c   :  { %109 = vmatpush.bf16.msra.mxu0 %v725_v6  ;;  %v753_v63 = vld [vmem:[#allocation5 + $0xe0] sm:$0xff]  ;;  %v768_v0 = vld [vmem:[#allocation5 + $0x158] sm:$0xff]  ;;  %v767_v1 = vld [vmem:[#allocation5 + $0x150] sm:$0xff] }
  0x1d   :  { %187 = vmatpush.bf16.msra.mxu1 %v733_v9  ;;  %268 = vmatpush.bf16.msra.mxu2 %v742_v17  ;;  %v766_v2 = vld [vmem:[#allocation5 + $0x148] sm:$0xff]  ;;  %v765_v3 = vld [vmem:[#allocation5 + $0x140] sm:$0xff]  ;;  %v381_v17 = vperm.slane %v919_v19, 4 }
  0x1e   :  { %v761_v15 = vld [vmem:[#allocation5 + $0x120] sm:$0xff] }
  0x1f   :  { %564 = vmatmul.msk.bf16.vlgmr.msra.gmra.mxu0 %vm98_vm0, %v64_v10  ;;  %350 = vmatpush.bf16.msra.mxu3 %v750_v34 }
  0x20   :  { %430 = vmatpush.bf16.msrb.mxu0 %v760_v48 }
  0x21   :  { %188 = vmatpush.bf16.msra.mxu1 %v732_v11  ;;  %269 = vmatpush.bf16.msra.mxu2 %v741_v18 }
  0x23   :  { %351 = vmatpush.bf16.msra.mxu3 %v749_v35 }
  0x24   :  { %431 = vmatpush.bf16.msrb.mxu0 %v759_v49 }
  0x25   :  { %189 = vmatpush.bf16.msra.mxu1 %v731_v12  ;;  %270 = vmatpush.bf16.msra.mxu2 %v740_v28  ;;  %v764_v12 = vld [vmem:[#allocation5 + $0x138] sm:$0xff] }
  0x27   :  { %352 = vmatpush.bf16.msra.mxu3 %v748_v44 }
  0x28   :  { %432 = vmatpush.bf16.msrb.mxu0 %v758_v50 }
  0x29   :  { %190 = vmatpush.bf16.msra.mxu1 %v730_v13  ;;  %271 = vmatpush.bf16.msra.mxu2 %v739_v29  ;;  %v763_v13 = vld [vmem:[#allocation5 + $0x130] sm:$0xff] }
  0x2b   :  { %353 = vmatpush.bf16.msra.mxu3 %v747_v45 }
  0x2c   :  { %433 = vmatpush.bf16.msrb.mxu0 %v757_v51 }
  0x2d   :  { %191 = vmatpush.bf16.msra.mxu1 %v729_v14  ;;  %272 = vmatpush.bf16.msra.mxu2 %v738_v30  ;;  %v762_v14 = vld [vmem:[#allocation5 + $0x128] sm:$0xff] }
  0x2f   :  { %354 = vmatpush.bf16.msra.mxu3 %v746_v46 }
  0x30   :  { %434 = vmatpush.bf16.msrb.mxu0 %v756_v60 }
  0x31   :  { %273 = vmatpush.bf16.msra.mxu2 %v737_v31  ;;  %512 = vmatpush.bf16.msrb.mxu1 %v768_v0 }
  0x33   :  { %355 = vmatpush.bf16.msra.mxu3 %v745_v47 }
  0x34   :  { %435 = vmatpush.bf16.msrb.mxu0 %v755_v61 }
  0x35   :  { %513 = vmatpush.bf16.msrb.mxu1 %v767_v1 }
  0x38   :  { %436 = vmatpush.bf16.msrb.mxu0 %v754_v62 }
  0x39   :  { %514 = vmatpush.bf16.msrb.mxu1 %v766_v2 }
  0x3c   :  { %437 = vmatpush.bf16.msrb.mxu0 %v753_v63 }
  0x3d   :  { %515 = vmatpush.bf16.msrb.mxu1 %v765_v3 }
  0x41   :  { %516 = vmatpush.bf16.msrb.mxu1 %v764_v12 }
  0x45   :  { %517 = vmatpush.bf16.msrb.mxu1 %v763_v13 }
  0x49   :  { %518 = vmatpush.bf16.msrb.mxu1 %v762_v14 }
  0x4d   :  { %519 = vmatpush.bf16.msrb.mxu1 %v761_v15 }
  0x9c   :  { %v111_v20 = vpop.f32.mrf.mxu0 }
  0x9d   :  { %v112_v22 = vadd.f32 %v111_v20, %v73_v21 }
  0x9f   :  { %v116_v25 = vmax.f32 %v112_v22, 0.0 }
  0xa4   :  { %v113_v23 = vpop.f32.mrf.mxu0 }
  0xa5   :  { %v114_v24 = vadd.f32 %v113_v23, %v73_v21 }
  0xa7   :  { %v117_v26 = vmax.f32 %v114_v24, 0.0 }
  0xa9   :  { %v118_v27 = vpack.c.bf16 %v117_v26, %v116_v25  ;;  %v463_v25 = vperm.slane %v919_v19, 5 }
  0xab   :  { %192 = vmatmul.bf16.vlgmr.msra.gmra.mxu1 %v118_v27 }
 0x128   :  { %v193_v36 = vpop.f32.mrf.mxu1 }
 0x129   :  { %v194_v38 = vadd.f32 %v193_v36, %v135_v37 }
 0x12b   :  { %v198_v41 = vmax.f32 %v194_v38, 0.0 }
 0x130   :  { %v195_v39 = vpop.f32.mrf.mxu1 }
 0x131   :  { %v196_v40 = vadd.f32 %v195_v39, %v135_v37 }
 0x133   :  { %v199_v42 = vmax.f32 %v196_v40, 0.0 }
 0x135   :  { %v200_v43 = vpack.c.bf16 %v199_v42, %v198_v41 }
 0x137   :  { %274 = vmatmul.bf16.vlgmr.msra.gmra.mxu2 %v200_v43 }
 0x1ba   :  { %v275_v52 = vpop.f32.mrf.mxu2 }
 0x1bb   :  { %v276_v54 = vadd.f32 %v275_v52, %v217_v53 }
 0x1bd   :  { %v280_v57 = vmax.f32 %v276_v54, 0.0 }
 0x1c2   :  { %v277_v55 = vpop.f32.mrf.mxu2 }
 0x1c3   :  { %v278_v56 = vadd.f32 %v277_v55, %v217_v53 }
 0x1c5   :  { %v281_v58 = vmax.f32 %v278_v56, 0.0 }
 0x1c7   :  { %v282_v59 = vpack.c.bf16 %v281_v58, %v280_v57 }
 0x1c9   :  { %356 = vmatmul.bf16.vlgmr.msra.gmra.mxu3 %v282_v59 }
 0x24c   :  { %v357_v4 = vpop.f32.mrf.mxu3 }
 0x24d   :  { %v358_v6 = vadd.f32 %v357_v4, %v299_v5 }
 0x24f   :  { %v362_v9 = vmax.f32 %v358_v6, 0.0 }
 0x254   :  { %v359_v7 = vpop.f32.mrf.mxu3 }
 0x255   :  { %v360_v8 = vadd.f32 %v359_v7, %v299_v5 }
 0x257   :  { %v363_v10 = vmax.f32 %v360_v8, 0.0 }
 0x259   :  { %v364_v11 = vpack.c.bf16 %v363_v10, %v362_v9 }
 0x25b   :  { %438 = vmatmul.bf16.vlgmr.msrb.gmra.mxu0 %v364_v11 }
 0x2d8   :  { %v439_v16 = vpop.f32.mrf.mxu0 }
 0x2d9   :  { %v440_v18 = vadd.f32 %v439_v16, %v381_v17 }
 0x2db   :  { %v444_v22 = vmax.f32 %v440_v18, 0.0 }
 0x2e0   :  { %v441_v20 = vpop.f32.mrf.mxu0 }
 0x2e1   :  { %v442_v21 = vadd.f32 %v441_v20, %v381_v17 }
 0x2e3   :  { %v445_v23 = vmax.f32 %v442_v21, 0.0 }
 0x2e5   :  { %v446_v24 = vpack.c.bf16 %v445_v23, %v444_v22 }
 0x2e7   :  { %520 = vmatmul.bf16.vlgmr.msrb.gmra.mxu1 %v446_v24 }
 0x364   :  { %v521_v26 = vpop.f32.mrf.mxu1 }
 0x365   :  { %v522_v27 = vadd.f32 %v521_v26, %v463_v25 }
 0x367   :  { %526 = vst [vmem:[#allocation8] sm:$0xff] %v522_v27 }
 0x36c   :  { %v523_v28 = vpop.f32.mrf.mxu1 }
 0x36d   :  { %v524_v29 = vadd.f32 %v523_v28, %v463_v25 }
 0x36f   :  { %527 = vst [vmem:[#allocation8 + $0x8] sm:$0xff] %v524_v29 }
 0x370   :  { %540 = dma.vmem_to_hbm [thread:$0]  %s533_s29, 256, %s535_s5, [#allocation4], %s883_s24, %s883_s24, %s884_s25  }
 0x371   :  { %877 = dma.done.wait [#allocation4], 256  }
 0x372   :  { %878 = vsyncadd [#allocation4], 4294967040 }
 0x373   :  { %545 = vsyncpa [#allocation3], 1 }
 0x374   :  { %546 = vsyncpa [#allocation6], 1 }
 0x375   :  { %547 = vsyncpa [#allocation4], 1 }

</bundles_post_ra>
